<compile_context>
chip_gen: v7x
topology: tpu7x:2x2x1
jax: 0.10.0
libtpu: 0.0.40
codegen_flags: <defaults>
</compile_context>

<pallas_src>
import functools

import jax
import jax.numpy as jnp
from jax import lax
from jax.experimental import pallas as pl
from jax.experimental.pallas import tpu as pltpu

BN_EPS = 1e-5

IN_FEATURES = 400     # contraction dim; MXU pads K internally, no lane pad needed
HIDDEN1 = 256         # 2 * 128, already lane-dense
HIDDEN2 = 64
HIDDEN2_PAD = 128     # 64  -> 128 (zero-padded, exact: see pad_params comment)
OUT_PAD = 128         # num_classes (10) -> 128 for an unmasked lane-dense store


def _bn_relu(h, gamma, beta):
    """Training-mode BatchNorm1d (biased batch stats) + ReLU, fused.

    One pass: sum and sum-of-squares sublane reductions, variance via
    E[x^2] - mean^2 (clamped at 0), per-feature affine folded into a single
    scale/shift (one vmul + one vadd on the activations). All f32.
    """
    inv_b = 1.0 / h.shape[0]                 # static Python constant
    s = jnp.sum(h, axis=0, keepdims=True)
    ss = jnp.sum(h * h, axis=0, keepdims=True)
    mean = s * inv_b
    var = jnp.maximum(ss * inv_b - mean * mean, 0.0)
    scale = gamma * lax.rsqrt(var + BN_EPS)
    shift = beta - mean * scale
    return jnp.maximum(h * scale + shift, 0.0)


def classifier_kernel(x_ref, w1_ref, v1_ref, w2_ref, v2_ref, w3_ref, o_ref):
    # bf16 MXU operands (cast in-kernel); f32 accumulation + f32 BN math.
    x = x_ref[...].astype(jnp.bfloat16)

    # Block 1: Linear(400 -> 256) + BN + ReLU. Linear bias is mathematically
    # absorbed by the BN mean subtraction, so it is omitted entirely.
    h = jnp.dot(x, w1_ref[...], preferred_element_type=jnp.float32)
    v1 = v1_ref[...]                       # [2, 256]: row 0 gamma, row 1 beta
    h = _bn_relu(h, v1[0:1, :], v1[1:2, :])

    # Block 2: Linear(256 -> 128pad) + BN + ReLU (padded lanes stay exactly 0:
    # zero weight columns -> zero mean/var -> gamma_pad=0 scale, beta_pad=0).
    h = jnp.dot(h.astype(jnp.bfloat16), w2_ref[...],
                preferred_element_type=jnp.float32)
    v2 = v2_ref[...]                       # [2, 128]
    h = _bn_relu(h, v2[0:1, :], v2[1:2, :])

    # Block 3 (last): Linear(128pad -> 128pad), no bias, no BN, no activation.
    o_ref[...] = jnp.dot(h.astype(jnp.bfloat16), w3_ref[...],
                         preferred_element_type=jnp.float32)


@functools.partial(jax.jit, static_argnames=("num_classes",))
def swin3d_wrapper_head(features, p, *, num_classes):
    """features: [B, 400] frozen-backbone output; p: packed/padded params.

    Returns [B, num_classes]. The pallas_call and the output slice live in the
    same jit so no standalone copy op is dispatched.
    """
    B, _ = features.shape
    args = (features, p["w1"], p["v1"], p["w2"], p["v2"], p["w3"])
    # Whole problem fits one VMEM-resident block (~0.35 MiB); gridless.
    vmem = pl.BlockSpec(memory_space=pltpu.MemorySpace.VMEM)
    out = pl.pallas_call(
        classifier_kernel,
        out_shape=jax.ShapeDtypeStruct((B, OUT_PAD), jnp.float32),
        in_specs=[vmem] * len(args),
        out_specs=vmem,
    )(*args)
    return out[:, :num_classes]


def init_params(key, in_features=400, hidden=(256, 64), num_classes=10):
    """Deterministic synthetic init, PyTorch-equivalent shapes but [in, out].

    Biases b1/b2 are generated for the reference model only; the kernel omits
    them because training-mode BN absorbs them exactly.
    """
    ks = jax.random.split(key, 3)

    def lin(k, fan_in, fan_out):
        bound = 1.0 / jnp.sqrt(fan_in)
        kw, kb = jax.random.split(k)
        w = jax.random.uniform(kw, (fan_in, fan_out), jnp.float32, -bound, bound)
        b = jax.random.uniform(kb, (1, fan_out), jnp.float32, -bound, bound)
        return w, b

    w1, b1 = lin(ks[0], in_features, hidden[0])
    w2, b2 = lin(ks[1], hidden[0], hidden[1])
    w3, _ = lin(ks[2], hidden[1], num_classes)      # last=True -> no bias
    return dict(
        w1=w1, b1=b1,
        g1=jnp.ones((1, hidden[0]), jnp.float32),
        be1=jnp.zeros((1, hidden[0]), jnp.float32),
        w2=w2, b2=b2,
        g2=jnp.ones((1, hidden[1]), jnp.float32),
        be2=jnp.zeros((1, hidden[1]), jnp.float32),
        w3=w3,
    )


def pad_params(p):
    """Pack gamma/beta per layer, zero-pad to lane-aligned shapes, cast MXU
    weights to bf16 (once, outside the hot path). Zero padding is exact:
    padded hidden-2 lanes get zero weight columns / gamma / beta (stay 0
    through BN+ReLU) and padded output columns are zero and sliced off."""
    def padded(a, shape):
        return jnp.pad(a, [(0, t - s) for s, t in zip(a.shape, shape)])

    v1 = jnp.concatenate([p["g1"], p["be1"]], axis=0)                    # [2, 256]
    v2 = jnp.concatenate([padded(p["g2"], (1, HIDDEN2_PAD)),
                          padded(p["be2"], (1, HIDDEN2_PAD))], axis=0)   # [2, 128]
    return dict(
        w1=p["w1"].astype(jnp.bfloat16),                                 # [400, 256]
        v1=v1,
        w2=padded(p["w2"], (HIDDEN1, HIDDEN2_PAD)).astype(jnp.bfloat16), # [256, 128]
        v2=v2,
        w3=padded(p["w3"], (HIDDEN2_PAD, OUT_PAD)).astype(jnp.bfloat16), # [128, 128]
    )


def reference(features, p):
    """Plain-JAX f32 reference of the original (unpadded, biased) forward."""
    def bnrelu(h, g, be):
        m = jnp.mean(h, axis=0, keepdims=True)
        v = jnp.mean((h - m) ** 2, axis=0, keepdims=True)
        return jnp.maximum((h - m) / jnp.sqrt(v + BN_EPS) * g + be, 0.0)
    h = bnrelu(features @ p["w1"] + p["b1"], p["g1"], p["be1"])
    h = bnrelu(h @ p["w2"] + p["b2"], p["g2"], p["be2"])
    return h @ p["w3"]


if __name__ == "__main__":
    key = jax.random.PRNGKey(0)
    k_feat, k_par = jax.random.split(key)

    B, NUM_CLASSES = 8, 10
    # Stand-in for the frozen swin3d_s backbone output (Kinetics-400 logits).
    features = jax.random.normal(k_feat, (B, IN_FEATURES), jnp.float32)
    params = init_params(k_par, IN_FEATURES, (HIDDEN1, HIDDEN2), NUM_CLASSES)
    packed = pad_params(params)

    out = swin3d_wrapper_head(features, packed, num_classes=NUM_CLASSES)
    out = jax.block_until_ready(out)

    ref = reference(features, params)
    assert out.shape == (B, NUM_CLASSES)
    # bf16 MXU operands in the kernel vs. pure-f32 reference: loose tolerance.
    max_err = float(jnp.max(jnp.abs(out - ref)))
    assert jnp.allclose(out, ref, atol=5e-2, rtol=5e-2), max_err
    print("KERNEL_OK")
</pallas_src>

<mosaic_0001>
module attributes {stable_mosaic.version = 11 : i64} {
  func.func @classifier_kernel(%arg0: memref<8x400xf32, #tpu.memory_space<vmem>>, %arg1: memref<400x256xbf16, #tpu.memory_space<vmem>>, %arg2: memref<2x256xf32, #tpu.memory_space<vmem>>, %arg3: memref<256x128xbf16, #tpu.memory_space<vmem>>, %arg4: memref<2x128xf32, #tpu.memory_space<vmem>>, %arg5: memref<128x128xbf16, #tpu.memory_space<vmem>>, %arg6: memref<8x128xf32, #tpu.memory_space<vmem>>) attributes {dimension_semantics = [], scalar_prefetch = 0 : i64, scratch_operands = 0 : i64, tpu.core_type = #tpu.core_type<tc>} {
    %c0 = arith.constant 0 : index
    %c0_0 = arith.constant 0 : index
    %0 = vector.load %arg0[%c0, %c0_0] : memref<8x400xf32, #tpu.memory_space<vmem>>, vector<8x400xf32>
    %1 = arith.truncf %0 : vector<8x400xf32> to vector<8x400xbf16>
    %c0_1 = arith.constant 0 : index
    %c0_2 = arith.constant 0 : index
    %2 = vector.load %arg1[%c0_1, %c0_2] : memref<400x256xbf16, #tpu.memory_space<vmem>>, vector<400x256xbf16>
    %cst = arith.constant dense<0.000000e+00> : vector<8x256xf32>
    %3 = tpu.matmul %1, %2, %cst {dimension_numbers = #tpu.dot_dimension_numbers<[1], [0], [0], [1], [0, 0, 1, 1], [], []>} : vector<8x400xbf16>, vector<400x256xbf16>, vector<8x256xf32> -> vector<8x256xf32>
    %c0_3 = arith.constant 0 : index
    %c0_4 = arith.constant 0 : index
    %4 = vector.load %arg2[%c0_3, %c0_4] : memref<2x256xf32, #tpu.memory_space<vmem>>, vector<2x256xf32>
    %5 = vector.extract_strided_slice %4 {offsets = [0, 0], sizes = [1, 256], strides = [1, 1]} : vector<2x256xf32> to vector<1x256xf32>
    %6 = vector.extract_strided_slice %4 {offsets = [1, 0], sizes = [1, 256], strides = [1, 1]} : vector<2x256xf32> to vector<1x256xf32>
    %cst_5 = arith.constant dense<0.000000e+00> : vector<256xf32>
    %7 = vector.multi_reduction <add>, %3, %cst_5 [0] : vector<8x256xf32> to vector<256xf32>
    %8 = vector.shape_cast %7 : vector<256xf32> to vector<1x256xf32>
    %9 = arith.mulf %3, %3 : vector<8x256xf32>
    %cst_6 = arith.constant dense<0.000000e+00> : vector<256xf32>
    %10 = vector.multi_reduction <add>, %9, %cst_6 [0] : vector<8x256xf32> to vector<256xf32>
    %11 = vector.shape_cast %10 : vector<256xf32> to vector<1x256xf32>
    %cst_7 = arith.constant 1.250000e-01 : f32
    %12 = vector.broadcast %cst_7 : f32 to vector<1x256xf32>
    %13 = arith.mulf %8, %12 : vector<1x256xf32>
    %cst_8 = arith.constant 1.250000e-01 : f32
    %14 = vector.broadcast %cst_8 : f32 to vector<1x256xf32>
    %15 = arith.mulf %11, %14 : vector<1x256xf32>
    %16 = arith.mulf %13, %13 : vector<1x256xf32>
    %17 = arith.subf %15, %16 : vector<1x256xf32>
    %cst_9 = arith.constant 0.000000e+00 : f32
    %18 = vector.broadcast %cst_9 : f32 to vector<1x256xf32>
    %19 = arith.maximumf %17, %18 : vector<1x256xf32>
    %cst_10 = arith.constant 9.99999974E-6 : f32
    %20 = vector.broadcast %cst_10 : f32 to vector<1x256xf32>
    %21 = arith.addf %19, %20 : vector<1x256xf32>
    %22 = math.rsqrt %21 : vector<1x256xf32>
    %23 = arith.mulf %5, %22 : vector<1x256xf32>
    %24 = arith.mulf %13, %23 : vector<1x256xf32>
    %25 = arith.subf %6, %24 : vector<1x256xf32>
    %26 = vector.broadcast %23 : vector<1x256xf32> to vector<8x256xf32>
    %27 = arith.mulf %3, %26 : vector<8x256xf32>
    %28 = vector.broadcast %25 : vector<1x256xf32> to vector<8x256xf32>
    %29 = arith.addf %27, %28 : vector<8x256xf32>
    %cst_11 = arith.constant 0.000000e+00 : f32
    %30 = vector.broadcast %cst_11 : f32 to vector<8x256xf32>
    %31 = arith.maximumf %29, %30 : vector<8x256xf32>
    %32 = arith.truncf %31 : vector<8x256xf32> to vector<8x256xbf16>
    %c0_12 = arith.constant 0 : index
    %c0_13 = arith.constant 0 : index
    %33 = vector.load %arg3[%c0_12, %c0_13] : memref<256x128xbf16, #tpu.memory_space<vmem>>, vector<256x128xbf16>
    %cst_14 = arith.constant dense<0.000000e+00> : vector<8x128xf32>
    %34 = tpu.matmul %32, %33, %cst_14 {dimension_numbers = #tpu.dot_dimension_numbers<[1], [0], [0], [1], [0, 0, 1, 1], [], []>} : vector<8x256xbf16>, vector<256x128xbf16>, vector<8x128xf32> -> vector<8x128xf32>
    %c0_15 = arith.constant 0 : index
    %c0_16 = arith.constant 0 : index
    %35 = vector.load %arg4[%c0_15, %c0_16] : memref<2x128xf32, #tpu.memory_space<vmem>>, vector<2x128xf32>
    %36 = vector.extract_strided_slice %35 {offsets = [0, 0], sizes = [1, 128], strides = [1, 1]} : vector<2x128xf32> to vector<1x128xf32>
    %37 = vector.extract_strided_slice %35 {offsets = [1, 0], sizes = [1, 128], strides = [1, 1]} : vector<2x128xf32> to vector<1x128xf32>
    %cst_17 = arith.constant dense<0.000000e+00> : vector<128xf32>
    %38 = vector.multi_reduction <add>, %34, %cst_17 [0] : vector<8x128xf32> to vector<128xf32>
    %39 = vector.shape_cast %38 : vector<128xf32> to vector<1x128xf32>
    %40 = arith.mulf %34, %34 : vector<8x128xf32>
    %cst_18 = arith.constant dense<0.000000e+00> : vector<128xf32>
    %41 = vector.multi_reduction <add>, %40, %cst_18 [0] : vector<8x128xf32> to vector<128xf32>
    %42 = vector.shape_cast %41 : vector<128xf32> to vector<1x128xf32>
    %cst_19 = arith.constant 1.250000e-01 : f32
    %43 = vector.broadcast %cst_19 : f32 to vector<1x128xf32>
    %44 = arith.mulf %39, %43 : vector<1x128xf32>
    %cst_20 = arith.constant 1.250000e-01 : f32
    %45 = vector.broadcast %cst_20 : f32 to vector<1x128xf32>
    %46 = arith.mulf %42, %45 : vector<1x128xf32>
    %47 = arith.mulf %44, %44 : vector<1x128xf32>
    %48 = arith.subf %46, %47 : vector<1x128xf32>
    %cst_21 = arith.constant 0.000000e+00 : f32
    %49 = vector.broadcast %cst_21 : f32 to vector<1x128xf32>
    %50 = arith.maximumf %48, %49 : vector<1x128xf32>
    %cst_22 = arith.constant 9.99999974E-6 : f32
    %51 = vector.broadcast %cst_22 : f32 to vector<1x128xf32>
    %52 = arith.addf %50, %51 : vector<1x128xf32>
    %53 = math.rsqrt %52 : vector<1x128xf32>
    %54 = arith.mulf %36, %53 : vector<1x128xf32>
    %55 = arith.mulf %44, %54 : vector<1x128xf32>
    %56 = arith.subf %37, %55 : vector<1x128xf32>
    %57 = vector.broadcast %54 : vector<1x128xf32> to vector<8x128xf32>
    %58 = arith.mulf %34, %57 : vector<8x128xf32>
    %59 = vector.broadcast %56 : vector<1x128xf32> to vector<8x128xf32>
    %60 = arith.addf %58, %59 : vector<8x128xf32>
    %cst_23 = arith.constant 0.000000e+00 : f32
    %61 = vector.broadcast %cst_23 : f32 to vector<8x128xf32>
    %62 = arith.maximumf %60, %61 : vector<8x128xf32>
    %63 = arith.truncf %62 : vector<8x128xf32> to vector<8x128xbf16>
    %c0_24 = arith.constant 0 : index
    %c0_25 = arith.constant 0 : index
    %64 = vector.load %arg5[%c0_24, %c0_25] : memref<128x128xbf16, #tpu.memory_space<vmem>>, vector<128x128xbf16>
    %cst_26 = arith.constant dense<0.000000e+00> : vector<8x128xf32>
    %65 = tpu.matmul %63, %64, %cst_26 {dimension_numbers = #tpu.dot_dimension_numbers<[1], [0], [0], [1], [0, 0, 1, 1], [], []>} : vector<8x128xbf16>, vector<128x128xbf16>, vector<8x128xf32> -> vector<8x128xf32>
    %c0_27 = arith.constant 0 : index
    %c0_28 = arith.constant 0 : index
    %66 = vector.load %arg6[%c0_27, %c0_28] : memref<8x128xf32, #tpu.memory_space<vmem>>, vector<8x128xf32>
    tpu.vector_store %arg6[%c0_27, %c0_28], %65 {strides = array<i32>} : memref<8x128xf32, #tpu.memory_space<vmem>>, vector<8x128xf32>,
    return
  }
}

</mosaic_0001>

<bundles_post_ra>
// kernel: swin3d_wrapper_head.1
= control target key start
LH: loop header
LB: loop body
LE: loop exit
PB: predicated region body
PF: predicated region fallthrough
CT: control target
= control target key end

     0   :  { %11 = vsyncpa [#allocation3], 0  ;;  %s1462_s0 = inlined_call_operand.hbm [shape: f32[8,400], index: 0, kind: input, shape index: {}]   ;;  %s1463_s1 = inlined_call_operand.hbm [shape: bf16[400,256], index: 1, kind: input, shape index: {}]   ;;  %s1464_s2 = inlined_call_operand.hbm [shape: f32[2,256], index: 2, kind: input, shape index: {}]   ;;  %s1465_s3 = inlined_call_operand.hbm [shape: bf16[256,128], index: 3, kind: input, shape index: {}]   ;;  %s1466_s4 = inlined_call_operand.vmem [shape: f32[2,128], index: 4, kind: input, shape index: {}]   ;;  %s1467_s5 = inlined_call_operand.hbm [shape: bf16[128,128], index: 5, kind: input, shape index: {}]   ;;  %s1468_s6 = inlined_call_operand.hbm [shape: f32[8,128], index: 6, kind: output, shape index: {}]  }
   0x1   :  { %12 = vsyncpa [#allocation6], 0 }
   0x2   :  { %13 = vsyncpa [#allocation9], 0 }
   0x3   :  { %14 = vsyncpa [#allocation4], 0  ;;  %s1314_s21 = smov [#allocation5]   ;;  %s1174_s25 = scalar_lea.hbm %s1463_s1, 6400 }
   0x4   :  { %s30_s22 = sshll.u32 %s1314_s21, 4  ;;  %p1175_p0 = scmp.ne.s32.totalorder %s1463_s1, %s1174_s25  ;;  %s31_s22 = int_to_ptr.vmem [resolvable:$true] %s30_s22 }
   0x5   :  { %p1178_p1 = scmp.lt.u32.totalorder %s1174_s25, %s1463_s1 }
   0x7   :  { %p1180_p2 = pnand %p1178_p1, %p1175_p0 }
   0x9   :  { %1183 = shalt.err (!%p1180_p2)
}
   0xa   :  { %s1184_s30 = scalar_lea.vmem %s31_s22, 6400  ;;  %p1189_p4 = scmp.lt.s32.totalorder %s31_s22, %s31_s22 }
   0xb   :  { %p1185_p3 = scmp.ne.s32.totalorder %s31_s22, %s1184_s30  ;;  %p1190_p5 = scmp.lt.s32.totalorder %s1184_s30, %s1184_s30 }
   0xd   :  { %p1191_p6 = por %p1190_p5, %p1189_p4 }
   0xf   :  { %p1192_p7 = pnand %p1191_p6, %p1185_p3 }
  0x11   :  { %1195 = shalt.err (!%p1192_p7)
}
  0x12   :  { %s1315_s7 = smov 128   ;;  %s1316_s8 = smov 8  }
  0x13   :  { %36 = dma.hbm_to_vmem [thread:$0]  %s1463_s1, 6400, %s31_s22, [#allocation6], %s1315_s7, %s1315_s7, %s1316_s8  }
  0x14   :  { %s1317_s11 = smov [#allocation8]   ;;  %s1196_s15 = scalar_lea.hbm %s1465_s3, 2048 }
  0x15   :  { %s52_s12 = sshll.u32 %s1317_s11, 4  ;;  %p1197_p8 = scmp.ne.s32.totalorder %s1465_s3, %s1196_s15  ;;  %s53_s12 = int_to_ptr.vmem [resolvable:$true] %s52_s12 }
  0x16   :  { %p1200_p9 = scmp.lt.u32.totalorder %s1196_s15, %s1465_s3 }
  0x18   :  { %p1202_p10 = pnand %p1200_p9, %p1197_p8 }
  0x1a   :  { %1205 = shalt.err (!%p1202_p10)
}
  0x1b   :  { %s1206_s20 = scalar_lea.vmem %s53_s12, 2048  ;;  %p1211_p12 = scmp.lt.s32.totalorder %s53_s12, %s53_s12 }
  0x1c   :  { %p1207_p11 = scmp.ne.s32.totalorder %s53_s12, %s1206_s20  ;;  %p1212_p13 = scmp.lt.s32.totalorder %s1206_s20, %s1206_s20 }
  0x1e   :  { %p1213_p0 = por %p1212_p13, %p1211_p12 }
  0x20   :  { %p1214_p1 = pnand %p1213_p0, %p1207_p11 }
  0x22   :  { %1217 = shalt.err (!%p1214_p1)
}
  0x23   :  { %s1318_s1 = smov 64   ;;  %s1319_s21 = smov 4  }
  0x24   :  { %58 = dma.hbm_to_vmem [thread:$0]  %s1465_s3, 2048, %s53_s12, [#allocation9], %s1318_s1, %s1318_s1, %s1319_s21  }
  0x25   :  { %s1320_s24 = smov [#allocation2]   ;;  %s1321_s26 = smov [#allocation7]  }
  0x26   :  { %s21_s25 = sshll.u32 %s1320_s24, 4  ;;  %s43_s27 = sshll.u32 %s1321_s26, 4  ;;  %s22_s25 = int_to_ptr.vmem [resolvable:$true] %s21_s25  ;;  %s44_s27 = int_to_ptr.vmem [resolvable:$true] %s43_s27 }
  0x27   :  { %s1218_s30 = scalar_lea.hbm %s1462_s0, 512 }
  0x28   :  { %p1219_p2 = scmp.ne.s32.totalorder %s1462_s0, %s1218_s30  ;;  %p1222_p3 = scmp.lt.u32.totalorder %s1218_s30, %s1462_s0 }
  0x2a   :  { %p1224_p4 = pnand %p1222_p3, %p1219_p2 }
  0x2c   :  { %1227 = shalt.err (!%p1224_p4)
}
  0x2d   :  { %s1228_s3 = scalar_lea.vmem %s22_s25, 512  ;;  %p1233_p6 = scmp.lt.s32.totalorder %s22_s25, %s22_s25 }
  0x2e   :  { %p1229_p5 = scmp.ne.s32.totalorder %s22_s25, %s1228_s3  ;;  %p1234_p7 = scmp.lt.s32.totalorder %s1228_s3, %s1228_s3 }
  0x30   :  { %p1235_p8 = por %p1234_p7, %p1233_p6 }
  0x32   :  { %p1236_p9 = pnand %p1235_p8, %p1229_p5 }
  0x34   :  { %1239 = shalt.err (!%p1236_p9)
}
  0x35   :  { %24 = dma.hbm_to_vmem [thread:$0]  %s1462_s0, 512, %s22_s25, [#allocation3]  }
  0x36   :  { %s1240_s15 = scalar_lea.hbm %s1464_s2, 64 }
  0x37   :  { %p1241_p10 = scmp.ne.s32.totalorder %s1464_s2, %s1240_s15  ;;  %p1244_p11 = scmp.lt.u32.totalorder %s1240_s15, %s1464_s2 }
  0x39   :  { %p1246_p12 = pnand %p1244_p11, %p1241_p10 }
  0x3b   :  { %1249 = shalt.err (!%p1246_p12)
}
  0x3c   :  { %s1250_s20 = scalar_lea.vmem %s44_s27, 64  ;;  %p1255_p0 = scmp.lt.s32.totalorder %s44_s27, %s44_s27 }
  0x3d   :  { %p1251_p13 = scmp.ne.s32.totalorder %s44_s27, %s1250_s20  ;;  %p1256_p1 = scmp.lt.s32.totalorder %s1250_s20, %s1250_s20 }
  0x3f   :  { %p1257_p2 = por %p1256_p1, %p1255_p0 }
  0x41   :  { %p1258_p3 = pnand %p1257_p2, %p1251_p13 }
  0x43   :  { %1261 = shalt.err (!%p1258_p3)
}
  0x44   :  { %46 = dma.hbm_to_vmem [thread:$0]  %s1464_s2, 64, %s44_s27, [#allocation6]  }
  0x45   :  { %s1322_s23 = smov [#allocation10]   ;;  %s1262_s28 = scalar_lea.hbm %s1467_s5, 1024 }
  0x46   :  { %s66_s24 = sshll.u32 %s1322_s23, 4  ;;  %p1263_p4 = scmp.ne.s32.totalorder %s1467_s5, %s1262_s28  ;;  %s67_s24 = int_to_ptr.vmem [resolvable:$true] %s66_s24 }
  0x47   :  { %p1266_p5 = scmp.lt.u32.totalorder %s1262_s28, %s1467_s5 }
  0x49   :  { %p1268_p6 = pnand %p1266_p5, %p1263_p4 }
  0x4b   :  { %1271 = shalt.err (!%p1268_p6)
}
  0x4c   :  { %s1272_s9 = scalar_lea.vmem %s67_s24, 1024  ;;  %p1277_p8 = scmp.lt.s32.totalorder %s67_s24, %s67_s24 }
  0x4d   :  { %p1273_p7 = scmp.ne.s32.totalorder %s67_s24, %s1272_s9  ;;  %p1278_p9 = scmp.lt.s32.totalorder %s1272_s9, %s1272_s9 }
  0x4f   :  { %p1279_p10 = por %p1278_p9, %p1277_p8 }
  0x51   :  { %p1280_p11 = pnand %p1279_p10, %p1273_p7 }
  0x53   :  { %1283 = shalt.err (!%p1280_p11)
}
  0x54   :  { %72 = dma.hbm_to_vmem [thread:$0]  %s1467_s5, 1024, %s67_s24, [#allocation9], %s1318_s1, %s1318_s1, %s1319_s21  }
  0x55   :  { %1306 = dma.done.wait [#allocation3], 512  }
  0x56   :  { %1307 = vsyncadd [#allocation3], 4294966784 }
  0x57   :  { %1308 = dma.done.wait [#allocation6], 6464  }
  0x58   :  { %1309 = vsyncadd [#allocation6], 4294960832 }
  0x59   :  { %1310 = dma.done.wait [#allocation9], 3072  }
  0x5a   :  { %1311 = vsyncadd [#allocation9], 4294964224  ;;  %v1069_v0 = vld [vmem:[#allocation5 + $0x4] ss:$8 sps:$4 sm:$0xff]   ;;  %v1071_v1 = vld [vmem:[#allocation5] ss:$8 sps:$4 sm:$0xff]  }
  0x5b   :  { %401 = vmatprep.subr.bf16.mxu0 %v1069_v0  ;;  %v1072_v2 = vld [vmem:[#allocation5 + $0x14] ss:$8 sps:$4 sm:$0xff]   ;;  %v1074_v3 = vld [vmem:[#allocation5 + $0x10] ss:$8 sps:$4 sm:$0xff]   ;;  %v1075_v4 = vld [vmem:[#allocation5 + $0x24] ss:$8 sps:$4 sm:$0xff]  }
  0x5c   :  { %402 = vmatpush1.bf16.msra.mxu0 %v1071_v1  ;;  %v1077_v5 = vld [vmem:[#allocation5 + $0x20] ss:$8 sps:$4 sm:$0xff]   ;;  %v1078_v6 = vld [vmem:[#allocation5 + $0x34] ss:$8 sps:$4 sm:$0xff]   ;;  %v1080_v7 = vld [vmem:[#allocation5 + $0x30] ss:$8 sps:$4 sm:$0xff]  }
  0x5d   :  { %403 = vmatprep.subr.bf16.mxu0 %v1072_v2  ;;  %v1081_v8 = vld [vmem:[#allocation5 + $0x44] ss:$8 sps:$4 sm:$0xff]   ;;  %v1083_v9 = vld [vmem:[#allocation5 + $0x40] ss:$8 sps:$4 sm:$0xff]   ;;  %v1084_v10 = vld [vmem:[#allocation5 + $0x54] ss:$8 sps:$4 sm:$0xff]  }
  0x5e   :  { %v1086_v11 = vld [vmem:[#allocation5 + $0x50] ss:$8 sps:$4 sm:$0xff]   ;;  %v1087_v12 = vld [vmem:[#allocation5 + $0x64] ss:$8 sps:$4 sm:$0xff]   ;;  %v1089_v15 = vld [vmem:[#allocation5 + $0x60] ss:$8 sps:$4 sm:$0xff]  }
  0x5f   :  { %v90_v13 = vld [vmem:[#allocation2 + $0x8] sm:$0xff]  ;;  %v1090_v16 = vld [vmem:[#allocation5 + $0x74] ss:$8 sps:$4 sm:$0xff]   ;;  %v1092_v17 = vld [vmem:[#allocation5 + $0x70] ss:$8 sps:$4 sm:$0xff]   ;;  %vm397_vm0 = vcmask 130048  }
  0x60   :  { %404 = vmatpush1.bf16.msra.mxu0 %v1074_v3  ;;  %v94_v14 = vpack.c.bf16 %v90_v13, %v90_v13  ;;  %v1093_v18 = vld [vmem:[#allocation5 + $0x84] ss:$8 sps:$4 sm:$0xff]   ;;  %v1095_v19 = vld [vmem:[#allocation5 + $0x80] ss:$8 sps:$4 sm:$0xff]   ;;  %v1096_v20 = vld [vmem:[#allocation5 + $0x94] ss:$8 sps:$4 sm:$0xff]  }
  0x61   :  { %405 = vmatprep.subr.bf16.mxu0 %v1075_v4  ;;  %v1098_v21 = vld [vmem:[#allocation5 + $0x90] ss:$8 sps:$4 sm:$0xff]   ;;  %v1099_v22 = vld [vmem:[#allocation5 + $0xa4] ss:$8 sps:$4 sm:$0xff]   ;;  %v1101_v23 = vld [vmem:[#allocation5 + $0xa0] ss:$8 sps:$4 sm:$0xff]  }
  0x62   :  { %433 = vmatprep.mubr.bf16.mxu0 %v94_v14  ;;  %v1102_v24 = vld [vmem:[#allocation5 + $0xb4] ss:$8 sps:$4 sm:$0xff]   ;;  %v1104_v25 = vld [vmem:[#allocation5 + $0xb0] ss:$8 sps:$4 sm:$0xff]   ;;  %v1105_v26 = vld [vmem:[#allocation5 + $0xc4] ss:$8 sps:$4 sm:$0xff]  }
  0x63   :  { %v1107_v27 = vld [vmem:[#allocation5 + $0xc0] ss:$8 sps:$4 sm:$0xff]   ;;  %v1108_v28 = vld [vmem:[#allocation5 + $0xd4] ss:$8 sps:$4 sm:$0xff]   ;;  %v1110_v29 = vld [vmem:[#allocation5 + $0xd0] ss:$8 sps:$4 sm:$0xff]  }
  0x64   :  { %406 = vmatpush1.bf16.msra.mxu0 %v1077_v5  ;;  %v1111_v30 = vld [vmem:[#allocation5 + $0xe4] ss:$8 sps:$4 sm:$0xff]   ;;  %v1113_v31 = vld [vmem:[#allocation5 + $0xe0] ss:$8 sps:$4 sm:$0xff]   ;;  %v1114_v32 = vld [vmem:[#allocation5 + $0xf4] ss:$8 sps:$4 sm:$0xff]  }
  0x65   :  { %407 = vmatprep.subr.bf16.mxu0 %v1078_v6  ;;  %v1116_v33 = vld [vmem:[#allocation5 + $0xf0] ss:$8 sps:$4 sm:$0xff]   ;;  %v89_v34 = vld [vmem:[#allocation2] sm:$0xff]  ;;  %v1122_v40 = vld [vmem:[#allocation5 + $0x114] ss:$8 sps:$4 sm:$0xff]   ;;  %vm1325_vm1 = vmmov 0  }
  0x66   :  { %v1119_v35 = vld [vmem:[#allocation5 + $0x104] ss:$8 sps:$4 sm:$0xff]   ;;  %v92_v36 = vld [vmem:[#allocation2 + $0x18] sm:$0xff]  ;;  %v93_v37 = vpack.c.bf16 %v89_v34, %v89_v34  ;;  %v1117_v38 = vld [vmem:[#allocation5 + $0x100] ss:$8 sps:$4 sm:$0xff]   ;;  %s1326_s21 = smov [#allocation11]  }
  0x67   :  { %v96_v39 = vpack.c.bf16 %v92_v36, %v92_v36  ;;  %v1120_v41 = vld [vmem:[#allocation5 + $0x110] ss:$8 sps:$4 sm:$0xff]   ;;  %v1125_v42 = vld [vmem:[#allocation5 + $0x124] ss:$8 sps:$4 sm:$0xff]   ;;  %v1123_v43 = vld [vmem:[#allocation5 + $0x120] ss:$8 sps:$4 sm:$0xff]  }
  0x68   :  { %408 = vmatpush1.bf16.msra.mxu0 %v1080_v7  ;;  %v1128_v44 = vld [vmem:[#allocation5 + $0x134] ss:$8 sps:$4 sm:$0xff]   ;;  %v1126_v45 = vld [vmem:[#allocation5 + $0x130] ss:$8 sps:$4 sm:$0xff]   ;;  %v1131_v46 = vld [vmem:[#allocation5 + $0x144] ss:$8 sps:$4 sm:$0xff]  }
  0x69   :  { %409 = vmatprep.subr.bf16.mxu0 %v1081_v8  ;;  %v1129_v47 = vld [vmem:[#allocation5 + $0x140] ss:$8 sps:$4 sm:$0xff]   ;;  %v1134_v48 = vld [vmem:[#allocation5 + $0x154] ss:$8 sps:$4 sm:$0xff]   ;;  %v1132_v49 = vld [vmem:[#allocation5 + $0x150] ss:$8 sps:$4 sm:$0xff]  }
  0x6a   :  { %v1137_v50 = vld [vmem:[#allocation5 + $0x164] ss:$8 sps:$4 sm:$0xff]   ;;  %v1135_v51 = vld [vmem:[#allocation5 + $0x160] ss:$8 sps:$4 sm:$0xff]   ;;  %v1140_v52 = vld [vmem:[#allocation5 + $0x174] ss:$8 sps:$4 sm:$0xff]  }
  0x6b   :  { %v1138_v53 = vld [vmem:[#allocation5 + $0x170] ss:$8 sps:$4 sm:$0xff]   ;;  %v1143_v54 = vld [vmem:[#allocation5 + $0x184] ss:$8 sps:$4 sm:$0xff]   ;;  %v1141_v55 = vld [vmem:[#allocation5 + $0x180] ss:$8 sps:$4 sm:$0xff]  }
  0x6c   :  { %410 = vmatpush1.bf16.msra.mxu0 %v1083_v9  ;;  %v91_v56 = vld [vmem:[#allocation2 + $0x10] sm:$0xff]  ;;  %v1146_v60 = vld [vmem:[#allocation8 + $0x48] sm:$0xff]   ;;  %v1148_v62 = vld [vmem:[#allocation8 + $0x50] sm:$0xff]   ;;  %s915_s10 = sshll.u32 %s1326_s21, 4  ;;  %s916_s10 = int_to_ptr.vmem [resolvable:$true] %s915_s10 }
  0x6d   :  { %411 = vmatprep.subr.bf16.mxu0 %v1084_v10  ;;  %v95_v57 = vpack.c.bf16 %v91_v56, %v91_v56  ;;  %v1144_v58 = vld [vmem:[#allocation8 + $0x40] sm:$0xff]   ;;  %v1147_v61 = vld [vmem:[#allocation8 + $0x8] sm:$0xff]   ;;  %v1149_v63 = vld [vmem:[#allocation8 + $0x10] sm:$0xff]   ;;  %p1289_p13 = scmp.lt.s32.totalorder %s916_s10, %s916_s10 }
  0x6e   :  { %v1145_v59 = vld [vmem:[#allocation8] sm:$0xff]   ;;  %1001 = vmatprep.subr.bf16.mxu1 %v1144_v58  ;;  %v1150_v0 = vld [vmem:[#allocation8 + $0x58] sm:$0xff]   ;;  %v1154_v4 = vld [vmem:[#allocation8 + $0x68] sm:$0xff]  }
  0x6f   :  { %1002 = vmatpush3.bf16.msra.mxu1 %v1145_v59  ;;  %v1151_v1 = vld [vmem:[#allocation8 + $0x18] sm:$0xff]   ;;  %v1152_v2 = vld [vmem:[#allocation8 + $0x60] sm:$0xff]   ;;  %v1155_v5 = vld [vmem:[#allocation8 + $0x28] sm:$0xff]  }
  0x70   :  { %412 = vmatpush1.bf16.msra.mxu0 %v1086_v11  ;;  %1003 = vmatprep.subr.bf16.mxu1 %v1146_v60  ;;  %v1153_v3 = vld [vmem:[#allocation8 + $0x20] sm:$0xff]   ;;  %v1156_v6 = vld [vmem:[#allocation8 + $0x70] sm:$0xff]   ;;  %v1158_v8 = vld [vmem:[#allocation8 + $0x78] sm:$0xff]  }
  0x71   :  { %413 = vmatprep.subr.bf16.mxu0 %v1087_v12  ;;  %v1157_v7 = vld [vmem:[#allocation8 + $0x30] sm:$0xff]   ;;  %v1159_v9 = vld [vmem:[#allocation8 + $0x38] sm:$0xff]  }
  0x73   :  { %1004 = vmatpush3.bf16.msra.mxu1 %v1147_v61  ;;  %v483_v61 = vld [vmem:[#allocation7] sm:$0xf] }
  0x74   :  { %414 = vmatpush1.bf16.msra.mxu0 %v1089_v15  ;;  %1005 = vmatprep.subr.bf16.mxu1 %v1148_v62 }
  0x75   :  { %415 = vmatprep.subr.bf16.mxu0 %v1090_v16 }
  0x77   :  { %1006 = vmatpush3.bf16.msra.mxu1 %v1149_v63 }
  0x78   :  { %416 = vmatpush1.bf16.msra.mxu0 %v1092_v17  ;;  %1007 = vmatprep.subr.bf16.mxu1 %v1150_v0 }
  0x79   :  { %417 = vmatprep.subr.bf16.mxu0 %v1093_v18 }
  0x7b   :  { %1008 = vmatpush3.bf16.msra.mxu1 %v1151_v1 }
  0x7c   :  { %418 = vmatpush1.bf16.msra.mxu0 %v1095_v19  ;;  %1009 = vmatprep.subr.bf16.mxu1 %v1152_v2 }
  0x7d   :  { %419 = vmatprep.subr.bf16.mxu0 %v1096_v20 }
  0x7f   :  { %1010 = vmatpush3.bf16.msra.mxu1 %v1153_v3 }
  0x80   :  { %420 = vmatpush1.bf16.msra.mxu0 %v1098_v21  ;;  %1011 = vmatprep.subr.bf16.mxu1 %v1154_v4 }
  0x81   :  { %421 = vmatprep.subr.bf16.mxu0 %v1099_v22 }
  0x83   :  { %1012 = vmatpush3.bf16.msra.mxu1 %v1155_v5 }
  0x84   :  { %422 = vmatpush1.bf16.msra.mxu0 %v1101_v23  ;;  %1013 = vmatprep.subr.bf16.mxu1 %v1156_v6 }
  0x85   :  { %423 = vmatprep.subr.bf16.mxu0 %v1102_v24 }
  0x87   :  { %1014 = vmatpush3.bf16.msra.mxu1 %v1157_v7 }
  0x88   :  { %424 = vmatpush1.bf16.msra.mxu0 %v1104_v25  ;;  %1015 = vmatprep.subr.bf16.mxu1 %v1158_v8 }
  0x89   :  { %425 = vmatprep.subr.bf16.mxu0 %v1105_v26 }
  0x8b   :  { %1016 = vmatpush3.bf16.msra.mxu1 %v1159_v9 }
  0x8c   :  { %426 = vmatpush1.bf16.msra.mxu0 %v1107_v27 }
  0x8d   :  { %427 = vmatprep.subr.bf16.mxu0 %v1108_v28 }
  0x90   :  { %428 = vmatpush1.bf16.msra.mxu0 %v1110_v29 }
  0x91   :  { %429 = vmatprep.subr.bf16.mxu0 %v1111_v30 }
  0x94   :  { %430 = vmatpush1.bf16.msra.mxu0 %v1113_v31 }
  0x95   :  { %431 = vmatprep.subr.bf16.mxu0 %v1114_v32 }
  0x98   :  { %432 = vmatpush1.bf16.msra.mxu0 %v1116_v33 }
  0x99   :  { %442 = vmatprep.subr.bf16.mxu0 %v1119_v35 }
  0x9b   :  { %434 = vmatmul.mubr.bf16.vlgmr.msra.gmra.mrb[0].mxu0 %v93_v37 }
  0x9c   :  { %443 = vmatpush1.bf16.msra.mxu0 %v1117_v38  ;;  %976 = vmatprep.mubr.msk.bf16.mxu0 %vm397_vm0, %v96_v39 }
  0x9d   :  { %444 = vmatprep.subr.bf16.mxu0 %v1122_v40 }
  0xa0   :  { %445 = vmatpush1.bf16.msra.mxu0 %v1120_v41 }
  0xa1   :  { %446 = vmatprep.subr.bf16.mxu0 %v1125_v42 }
  0xa4   :  { %447 = vmatpush1.bf16.msra.mxu0 %v1123_v43 }
  0xa5   :  { %448 = vmatprep.subr.bf16.mxu0 %v1128_v44 }
  0xa8   :  { %449 = vmatpush1.bf16.msra.mxu0 %v1126_v45 }
  0xa9   :  { %450 = vmatprep.subr.bf16.mxu0 %v1131_v46 }
  0xac   :  { %451 = vmatpush1.bf16.msra.mxu0 %v1129_v47 }
  0xad   :  { %452 = vmatprep.subr.bf16.mxu0 %v1134_v48 }
  0xb0   :  { %453 = vmatpush1.bf16.msra.mxu0 %v1132_v49 }
  0xb1   :  { %454 = vmatprep.subr.bf16.mxu0 %v1137_v50 }
  0xb4   :  { %455 = vmatpush1.bf16.msra.mxu0 %v1135_v51 }
  0xb5   :  { %456 = vmatprep.subr.bf16.mxu0 %v1140_v52  ;;  %v1323_v52 = vmov 1983009808  }
  0xb8   :  { %457 = vmatpush1.bf16.msra.mxu0 %v1138_v53  ;;  %v528_v53 = vunpack.c.l.s4 %v1323_v52 }
  0xb9   :  { %458 = vmatprep.subr.bf16.mxu0 %v1143_v54  ;;  %v530_v54 = vlaneseq }
  0xbb   :  { %v531_v56 = vshrl.u32 %v530_v54, 7 }
  0xbc   :  { %459 = vmatpush1.bf16.msra.mxu0 %v1141_v55  ;;  %v529_v55 = vunpack.c.0.s8 %v528_v53 }
  0xbd   :  { %v1434_v63 = vsub.s32 0, %v531_v56  ;;  %v543_v0 = vsub.s32 2, %v531_v56 }
  0xbe   :  { %v532_v58 = vsub.s32 %v529_v55, %v531_v56 }
  0xbf   :  { %475 = vmatmul.mubr.bf16.vlgmr.msra.gmra.mrb[0].mxu0 %v95_v57 }
 0x192   :  { %v1428_v10 = vpop.f32.mrb[0].mxu0 }
 0x193   :  { %v484_v11 = vrot.slane %v1428_v10, 4  ;;  %v496_v12 = vmul.f32 %v1428_v10, %v1428_v10  ;;  %v478_v13 = vpop.f32.mrb[1].mxu0 }
 0x194   :  { %v490_v14 = vrot.slane %v478_v13, 4  ;;  %v497_v15 = vmul.f32 %v478_v13, %v478_v13  ;;  %v480_v16 = vpop.f32.mrb[2].mxu0 }
 0x195   :  { %v485_v17 = vadd.f32 %v484_v11, %v1428_v10  ;;  %v498_v18 = vrot.slane %v496_v12, 4  ;;  %v481_v19 = vpop.f32.mrb[3].mxu0  ;;  %v579_v16 = vsub.s32 3, %v531_v56 }
 0x196   :  { %v491_v20 = vadd.f32 %v490_v14, %v478_v13  ;;  %v504_v21 = vrot.slane %v497_v15, 4 }
 0x197   :  { %v486_v22 = vrot.slane %v485_v17, 2  ;;  %v499_v23 = vadd.f32 %v498_v18, %v496_v12 }
 0x198   :  { %v492_v24 = vrot.slane %v491_v20, 2  ;;  %v505_v25 = vadd.f32 %v504_v21, %v497_v15  ;;  %v1440_v15 = vsub.s32 1, %v531_v56 }
 0x199   :  { %v487_v26 = vadd.f32 %v486_v22, %v485_v17  ;;  %v500_v27 = vrot.slane %v499_v23, 2 }
 0x19a   :  { %v493_v28 = vadd.f32 %v492_v24, %v491_v20  ;;  %v506_v29 = vrot.slane %v505_v25, 2 }
 0x19b   :  { %v488_v30 = vrot.slane %v487_v26, 1  ;;  %v501_v31 = vadd.f32 %v500_v27, %v499_v23  ;;  %v1324_v27 = vmov 0.0  }
 0x19c   :  { %v494_v32 = vrot.slane %v493_v28, 1  ;;  %v507_v33 = vadd.f32 %v506_v29, %v505_v25  ;;  %1032 = vmatprep.subr.bf16.mxu1 %v1324_v27  ;;  %v1162_v29 = vld [vmem:[#allocation10 + $0x10] sm:$0xff]  }
 0x19d   :  { %v489_v34 = vadd.f32 %v488_v30, %v487_v26  ;;  %v502_v35 = vrot.slane %v501_v31, 1  ;;  %v1163_v30 = vld [vmem:[#allocation10 + $0x18] sm:$0xff]  }
 0x19e   :  { %v495_v36 = vadd.f32 %v494_v32, %v493_v28  ;;  %v508_v37 = vrot.slane %v507_v33, 1  ;;  %v1161_v28 = vld [vmem:[#allocation10 + $0x8] sm:$0xff]  }
 0x19f   :  { %v503_v38 = vadd.f32 %v502_v35, %v501_v31  ;;  %v510_v39 = vmul.f32 0.125, %v489_v34  ;;  %v1164_v31 = vld [vmem:[#allocation10 + $0x20] sm:$0xff]   ;;  %v1165_v32 = vld [vmem:[#allocation10 + $0x28] sm:$0xff]   ;;  %v1167_v34 = vld [vmem:[#allocation10 + $0x38] sm:$0xff]  }
 0x1a0   :  { %v509_v40 = vadd.f32 %v508_v37, %v507_v33  ;;  %v511_v41 = vmul.f32 0.125, %v495_v36  ;;  %v1166_v33 = vld [vmem:[#allocation10 + $0x30] sm:$0xff]  }
 0x1a1   :  { %v512_v42 = vmul.f32 0.125, %v503_v38  ;;  %v514_v43 = vmul.f32 %v510_v39, %v510_v39 }
 0x1a2   :  { %v513_v44 = vmul.f32 0.125, %v509_v40  ;;  %v515_v45 = vmul.f32 %v511_v41, %v511_v41 }
 0x1a3   :  { %v516_v46 = vsub.f32 %v512_v42, %v514_v43 }
 0x1a4   :  { %v517_v47 = vsub.f32 %v513_v44, %v515_v45 }
 0x1a5   :  { %v518_v48 = vmax.f32 %v516_v46, 0.0 }
 0x1a6   :  { %v519_v49 = vmax.f32 %v517_v47, 0.0 }
 0x1a7   :  { %v520_v50 = vadd.f32 1e-05, %v518_v48 }
 0x1a8   :  { %v521_v51 = vadd.f32 1e-05, %v519_v49 }
 0x1a9   :  { %1168 = vrsqrt.f32 %v520_v50 }
 0x1aa   :  { %1170 = vrsqrt.f32 %v521_v51 }
 0x1b3   :  { %v1169_v57 = vpop.eup %1168 }
 0x1b4   :  { %v1171_v59 = vpop.eup %1170 }
 0x1b5   :  { %v526_v60 = vcombine.low %v1169_v57, %v1171_v59  ;;  %v765_v59 = vld [vmem:[%s1466_s4] sm:$0x3]  ;;  %s1284_s4 = scalar_lea.vmem %s916_s10, 128 }
 0x1b6   :  { %p1285_p12 = scmp.ne.s32.totalorder %s916_s10, %s1284_s4  ;;  %p1290_p0 = scmp.lt.s32.totalorder %s1284_s4, %s1284_s4 }
 0x1b7   :  { %v533_v62 = vrot.slane %v526_v60, %v532_v58 }
 0x1b8   :  { %p1291_p1 = por %p1290_p0, %p1289_p13 }
 0x1b9   :  { %v535_v1 = vmul.f32 %v533_v62, %v483_v61 }
 0x1ba   :  { %p1292_p2 = pnand %p1291_p1, %p1285_p12 }
 0x1bb   :  { %v540_v2 = vrot.slane %v535_v1, %v1434_v63  ;;  %v544_v3 = vrot.slane %v535_v1, %v543_v0 }
 0x1bd   :  { %v547_v4 = vmul.f32 %v540_v2, %v510_v39  ;;  %v548_v5 = vmul.f32 %v544_v3, %v511_v41  ;;  %v569_v6 = vrot.slane %v544_v3, %v1434_v63  ;;  %v565_v7 = vrot.slane %v540_v2, %v1434_v63 }
 0x1bf   :  { %v551_v8 = vcombine.low %v547_v4, %v548_v5  ;;  %v571_v9 = vmul.f32 %v569_v6, %v478_v13  ;;  %v570_v11 = vmul.f32 %v565_v7, %v1428_v10  ;;  %v1160_v10 = vld [vmem:[#allocation10] sm:$0xff]  }
 0x1c1   :  { %v558_v12 = vrot.slane %v551_v8, %v532_v58 }
 0x1c3   :  { %v559_v14 = vrot.slane %v558_v12, 7 }
 0x1c5   :  { %v561_v17 = vsub.f32 %v483_v61, %v559_v14 }
 0x1c7   :  { %v580_v18 = vrot.slane %v561_v17, %v579_v16  ;;  %v576_v19 = vrot.slane %v561_v17, %v1440_v15 }
 0x1c9   :  { %v590_v20 = vrot.slane %v580_v18, %v1440_v15  ;;  %v586_v21 = vrot.slane %v576_v19, %v1440_v15 }
 0x1cb   :  { %v592_v22 = vadd.f32 %v590_v20, %v571_v9  ;;  %v591_v23 = vadd.f32 %v586_v21, %v570_v11 }
 0x1cd   :  { %v594_v24 = vmax.f32 %v592_v22, 0.0  ;;  %v593_v25 = vmax.f32 %v591_v23, 0.0 }
 0x1cf   :  { %v596_v13 = vpack.c.bf16 %v594_v24, %v594_v24  ;;  %v595_v26 = vpack.c.bf16 %v593_v25, %v593_v25 }
 0x1d1   :  { %757 = vmatprep.mubr.bf16.mxu1 %v596_v13 }
 0x1d2   :  { %758 = vmatmul.mubr.bf16.vlgmr.msra.gmra.mrb[0].mxu1 %v595_v26 }
 0x1d3   :  { %1033 = vmatpush3.bf16.msra.mxu1 %v1160_v10  ;;  %1048 = vmatprep.mubr.msk.bf16.mxu1 %vm1325_vm1, %v1324_v27 }
 0x1d4   :  { %1034 = vmatprep.subr.bf16.mxu1 %v1324_v27 }
 0x1d7   :  { %1035 = vmatpush3.bf16.msra.mxu1 %v1161_v28 }
 0x1d8   :  { %1036 = vmatprep.subr.bf16.mxu1 %v1324_v27 }
 0x1db   :  { %1037 = vmatpush3.bf16.msra.mxu1 %v1162_v29 }
 0x1dc   :  { %1038 = vmatprep.subr.bf16.mxu1 %v1324_v27 }
 0x1df   :  { %1039 = vmatpush3.bf16.msra.mxu1 %v1163_v30 }
 0x1e0   :  { %1040 = vmatprep.subr.bf16.mxu1 %v1324_v27 }
 0x1e3   :  { %1041 = vmatpush3.bf16.msra.mxu1 %v1164_v31 }
 0x1e4   :  { %1042 = vmatprep.subr.bf16.mxu1 %v1324_v27 }
 0x1e7   :  { %1043 = vmatpush3.bf16.msra.mxu1 %v1165_v32 }
 0x1e8   :  { %1044 = vmatprep.subr.bf16.mxu1 %v1324_v27 }
 0x1eb   :  { %1045 = vmatpush3.bf16.msra.mxu1 %v1166_v33 }
 0x1ec   :  { %1046 = vmatprep.subr.bf16.mxu1 %v1324_v27 }
 0x1ef   :  { %1047 = vmatpush3.bf16.msra.mxu1 %v1167_v34 }
 0x2a5   :  { %v1017_v35 = vpop.f32.mrb[0].mxu1 }
 0x2a6   :  { %v1018_v36 = vpop.f32.mrb[1].mxu1 }
 0x2a7   :  { %v1019_v37 = vadd.f32 %v1018_v36, %v1017_v35  ;;  %v1020_v38 = vpop.f32.mrb[2].mxu1 }
 0x2a8   :  { %v1021_v39 = vpop.f32.mrb[3].mxu1 }
 0x2a9   :  { %v766_v40 = vrot.slane %v1019_v37, 4  ;;  %v772_v41 = vmul.f32 %v1019_v37, %v1019_v37 }
 0x2ab   :  { %v767_v42 = vadd.f32 %v1019_v37, %v766_v40  ;;  %v773_v43 = vrot.slane %v772_v41, 4 }
 0x2ad   :  { %v768_v44 = vrot.slane %v767_v42, 2  ;;  %v774_v45 = vadd.f32 %v773_v43, %v772_v41 }
 0x2af   :  { %v769_v46 = vadd.f32 %v768_v44, %v767_v42  ;;  %v775_v47 = vrot.slane %v774_v45, 2 }
 0x2b1   :  { %v770_v48 = vrot.slane %v769_v46, 1  ;;  %v776_v49 = vadd.f32 %v775_v47, %v774_v45 }
 0x2b3   :  { %v771_v50 = vadd.f32 %v770_v48, %v769_v46  ;;  %v777_v51 = vrot.slane %v776_v49, 1 }
 0x2b5   :  { %v778_v52 = vadd.f32 %v777_v51, %v776_v49  ;;  %v779_v53 = vmul.f32 0.125, %v771_v50 }
 0x2b7   :  { %v780_v54 = vmul.f32 0.125, %v778_v52  ;;  %v781_v55 = vmul.f32 %v779_v53, %v779_v53 }
 0x2b9   :  { %v782_v56 = vsub.f32 %v780_v54, %v781_v55 }
 0x2bb   :  { %v783_v57 = vmax.f32 %v782_v56, 0.0 }
 0x2bd   :  { %v784_v58 = vadd.f32 1e-05, %v783_v57 }
 0x2bf   :  { %1172 = vrsqrt.f32 %v784_v58 }
 0x2c9   :  { %v1173_v60 = vpop.eup %1172 }
 0x2ca   :  { %v786_v61 = vmul.f32 %v1173_v60, %v765_v59 }
 0x2cc   :  { %v787_v62 = vmul.f32 %v786_v61, %v779_v53  ;;  %v795_v0 = vrot.slane %v786_v61, %v1434_v63 }
 0x2ce   :  { %v789_v1 = vrot.slane %v787_v62, 7  ;;  %v796_v3 = vmul.f32 %v1019_v37, %v795_v0 }
 0x2d0   :  { %v791_v2 = vsub.f32 %v765_v59, %v789_v1 }
 0x2d2   :  { %v800_v4 = vrot.slane %v791_v2, %v1440_v15 }
 0x2d4   :  { %v801_v5 = vadd.f32 %v800_v4, %v796_v3 }
 0x2d6   :  { %v802_v6 = vmax.f32 %v801_v5, 0.0 }
 0x2d8   :  { %v803_v7 = vpack.c.bf16 %v802_v6, %v802_v6 }
 0x2da   :  { %1049 = vmatmul.mubr.bf16.vlgmr.msra.gmra.mrb[4].mxu1 %v803_v7 }
 0x3ad   :  { %v902_v8 = vpop.f32.mrb[4].mxu1 }
 0x3ae   :  { %908 = vst [vmem:[#allocation11] sm:$0xff] %v902_v8  ;;  %v1050_v9 = vpop.f32.mrb[5].mxu1 }
 0x3af   :  { %v905_v11 = vpop.f32.mrb[6].mxu1 }
 0x3b0   :  { %1295 = shalt.err (!%p1292_p2)
}
 0x3b1   :  { %s1296_s12 = scalar_lea.hbm %s1468_s6, 128 }
 0x3b2   :  { %p1297_p3 = scmp.ne.s32.totalorder %s1468_s6, %s1296_s12  ;;  %p1300_p4 = scmp.lt.u32.totalorder %s1296_s12, %s1468_s6 }
 0x3b4   :  { %p1302_p5 = pnand %p1300_p4, %p1297_p3 }
 0x3b6   :  { %1305 = shalt.err (!%p1302_p5)
}
 0x3b7   :  { %918 = dma.vmem_to_hbm [thread:$0]  %s916_s10, 128, %s1468_s6, [#allocation4]   ;;  %v1051_v63 = vpop.f32.mrb[7].mxu1 }
 0x3b8   :  { %1312 = dma.done.wait [#allocation4], 128  }
 0x3b9   :  { %1313 = vsyncadd [#allocation4], 4294967168 }
 0x3ba   :  { %922 = vsyncpa [#allocation3], 1 }
 0x3bb   :  { %923 = vsyncpa [#allocation6], 1 }
 0x3bc   :  { %924 = vsyncpa [#allocation9], 1 }
 0x3bd   :  { %925 = vsyncpa [#allocation4], 1 }

</bundles_post_ra>
